<compile_context>
chip_gen: v7x
topology: tpu7x:2x2x1
jax: 0.10.0
libtpu: 0.0.40
codegen_flags: <defaults>
</compile_context>

<pallas_src>
import jax
import jax.numpy as jnp
from jax import lax
from jax.experimental import pallas as pl
from jax.experimental.pallas import tpu as pltpu

_LANE = 128


def _min_value(dtype):
    dtype = jnp.dtype(dtype)
    if jnp.issubdtype(dtype, jnp.floating):
        return float("-inf")
    if jnp.issubdtype(dtype, jnp.integer):
        return int(jnp.iinfo(dtype).min)
    raise ValueError(f"unsupported dtype for max-pooling: {dtype}")


def _round_up(x, m):
    return ((x + m - 1) // m) * m


def _vmem_capacity_bytes():
    """Physical VMEM bytes for the current chip; conservative fallback (v7x=64MiB)."""
    try:
        cap = getattr(pltpu.get_tpu_info(), "vmem_capacity_bytes", None)
        if cap:
            return int(cap)
    except Exception:
        pass
    return 64 * 1024 * 1024


def _make_group_all_max_kernel(num_inputs, min_vals, needs_mask, num_k, bt, nb_total):
    """Running channel-wise max over lane-dense (f, bt, 128) tiles of the N axis."""

    def kernel(*args):
        in_refs = args[:num_inputs]                    # each: (1, f_i, bt, 128)
        out_refs = args[num_inputs:2 * num_inputs]     # each: (1, 1, f_i, 1)
        run_refs = args[2 * num_inputs:]               # VMEM scratch: (f_i, bt, 128)
        k = pl.program_id(2)

        @pl.when(k == 0)
        def _init():
            for run, mv in zip(run_refs, min_vals):
                run[...] = jnp.full(run.shape, mv, run.dtype)

        if needs_mask:
            s = pl.program_id(0)
            tile = s * num_k + k                        # unclamped global tile index
            remaining = nb_total - tile * bt            # valid 128-col rows in this tile
            row_ids = lax.broadcasted_iota(jnp.int32, (1, bt, _LANE), 1)
            valid = row_ids < remaining
        for in_ref, run, mv in zip(in_refs, run_refs, min_vals):
            x = in_ref[0]                               # (f, bt, 128)
            if needs_mask:
                x = jnp.where(valid, x, mv)
            run[...] = jnp.maximum(run[...], x)         # VPU elementwise running max

        @pl.when(k == num_k - 1)
        def _finalize():
            # One cross-lane + cross-sublane reduce per (split, batch).
            for out_ref, run in zip(out_refs, run_refs):
                m = jnp.max(run[...], axis=2)                    # (f, bt)
                out_ref[0, 0] = jnp.max(m, axis=1, keepdims=True)  # (f, 1)

    return kernel


def pointnet_set_abstraction(xyz, points=None, *, group_all=True, n_splits=None):
    """JAX/Pallas equivalent of PointNetSetAbstraction.forward (group_all=True).

    Args:
      xyz:    [B, C, N] array (channels-first coordinates).
      points: [B, D, N] array or None (extra per-point features).
      n_splits: optional parallel split count of the N range (default: 2 when B==1
        to fill both v7x TensorCores, else 1).
    Returns:
      new_xyz:    [B, C, 1] zeros (matching sample_and_group_all).
      new_points: [B, C+D, 1] channel-wise max over all N points.
    """
    assert group_all, "only the group_all=True branch is supported"
    B, C, N = xyz.shape

    inputs = [xyz]
    if points is not None:
        assert points.shape[0] == B and points.shape[2] == N
        inputs.append(points)  # keep native dtype: no wrapper upcast / HBM inflation
    feat_dims = [int(a.shape[1]) for a in inputs]
    min_vals = [_min_value(a.dtype) for a in inputs]

    # ---- lane-dense layout: [B, f, N] -> [B, f, NB, 128] (metadata-only if N%128==0).
    n_pad = _round_up(N, _LANE)
    nb = n_pad // _LANE
    reshaped = []
    for a, mv in zip(inputs, min_vals):
        if n_pad != N:
            # Only hit for N not a multiple of 128: pad with the max identity.
            a = jnp.pad(a, ((0, 0), (0, 0), (0, n_pad - N)), constant_values=mv)
        reshaped.append(a.reshape(B, a.shape[1], nb, _LANE))

    # ---- optional N-split across TensorCores (v7x) when batch alone can't fill them.
    if n_splits is None:
        n_splits = 2 if B == 1 else 1
    n_splits = max(1, min(int(n_splits), nb))

    # ---- generation-aware tile size along the NB (128-column) axis.
    vmem_cap = _vmem_capacity_bytes()
    budget = (vmem_cap * 3) // 8  # ~24 MiB on v7x (64 MiB VMEM), ~48 MiB on v5e/v6e (128 MiB)
    # Per unit of bt: 2 double-buffered input blocks + 1 running-max scratch, per input.
    bytes_per_bt = sum(3 * f * _LANE * jnp.dtype(a.dtype).itemsize
                       for f, a in zip(feat_dims, inputs))
    bt = max(8, (budget // bytes_per_bt) // 8 * 8)
    bt = min(bt, _round_up(pl.cdiv(nb, n_splits), 8))   # never bigger than one split's data

    total_tiles = pl.cdiv(nb, bt)
    num_k = pl.cdiv(total_tiles, n_splits)
    needs_mask = (n_splits * num_k * bt != nb)

    if needs_mask:
        # Clamp so a fully-out-of-range tile re-reads the last valid tile (then masked).
        def nb_block(s, b, k):
            return jnp.minimum(s * num_k + k, total_tiles - 1)
    else:
        def nb_block(s, b, k):
            return s * num_k + k

    in_specs = [
        pl.BlockSpec((1, f, bt, _LANE), lambda s, b, k: (b, 0, nb_block(s, b, k), 0))
        for f in feat_dims
    ]
    out_specs = tuple(
        pl.BlockSpec((1, 1, f, 1), lambda s, b, k: (s, b, 0, 0)) for f in feat_dims
    )
    out_shape = tuple(
        jax.ShapeDtypeStruct((n_splits, B, f, 1), a.dtype)
        for f, a in zip(feat_dims, inputs)
    )
    scratch_shapes = [
        pltpu.VMEM((f, bt, _LANE), a.dtype) for f, a in zip(feat_dims, inputs)
    ]

    used = bytes_per_bt * bt
    vmem_limit = int(min(vmem_cap - (4 << 20), max(used + (8 << 20), 32 << 20)))

    kernel = _make_group_all_max_kernel(len(inputs), min_vals, needs_mask, num_k, bt, nb)

    outs = pl.pallas_call(
        kernel,
        out_shape=out_shape,
        grid=(n_splits, B, num_k),
        in_specs=in_specs,
        out_specs=out_specs,
        scratch_shapes=scratch_shapes,
        compiler_params=pltpu.CompilerParams(
            dimension_semantics=("parallel", "parallel", "arbitrary"),
            vmem_limit_bytes=vmem_limit,
        ),
    )(*reshaped)

    # Combine split partial maxes and concat channels (tiny [n_splits, B, f, 1] arrays).
    pooled = [jnp.max(o, axis=0) for o in outs]  # each (B, f, 1)
    new_points = pooled[0] if len(pooled) == 1 else jnp.concatenate(pooled, axis=1)
    new_xyz = jnp.zeros((B, C, 1), dtype=xyz.dtype)  # sample_and_group_all centers
    return new_xyz, new_points


if __name__ == "__main__":
    key = jax.random.PRNGKey(0)
    k_xyz, k_pts, k_xyz2, k_xyz3 = jax.random.split(key, 4)

    # Case 1: B=2, C=3, D=4, N=1152 (= 9*128, not a multiple of the 8x128 tile:
    # exercises the cdiv grid + in-kernel tail masking).
    B, C, D, N = 2, 3, 4, 1152
    xyz = jax.random.normal(k_xyz, (B, C, N), dtype=jnp.float32)
    points = jax.random.normal(k_pts, (B, D, N), dtype=jnp.float32)
    new_xyz, new_points = pointnet_set_abstraction(xyz, points, group_all=True)
    new_xyz = jax.block_until_ready(new_xyz)
    new_points = jax.block_until_ready(new_points)

    ref_points = jnp.max(jnp.concatenate([xyz, points], axis=1), axis=-1, keepdims=True)
    assert new_xyz.shape == (B, C, 1)
    assert new_points.shape == (B, C + D, 1)
    assert jnp.allclose(new_xyz, jnp.zeros((B, C, 1), xyz.dtype))
    assert jnp.allclose(new_points, ref_points, atol=1e-6)

    # Case 2: B=1, points=None, N=1024 -> exercises the 2-way N split across
    # TensorCores (the all-masked split collapses to -inf and is removed in the wrapper).
    xyz1 = jax.random.normal(k_xyz2, (1, 3, 1024), dtype=jnp.float32)
    _, np1 = pointnet_set_abstraction(xyz1, None, group_all=True)
    np1 = jax.block_until_ready(np1)
    assert np1.shape == (1, 3, 1)
    assert jnp.allclose(np1, jnp.max(xyz1, axis=-1, keepdims=True), atol=1e-6)

    # Case 3: N not a multiple of 128 -> wrapper pads with the max identity.
    xyz2 = jax.random.normal(k_xyz3, (2, 3, 200), dtype=jnp.float32)
    _, np2 = pointnet_set_abstraction(xyz2, None, group_all=True)
    np2 = jax.block_until_ready(np2)
    assert np2.shape == (2, 3, 1)
    assert jnp.allclose(np2, jnp.max(xyz2, axis=-1, keepdims=True), atol=1e-6)

    print("KERNEL_OK")
</pallas_src>

<mosaic_0001>
module attributes {stable_mosaic.version = 11 : i64} {
  func.func @kernel(%arg0: i32, %arg1: i32, %arg2: i32, %arg3: memref<1x3x16x128xf32, #tpu.memory_space<vmem>>, %arg4: memref<1x4x16x128xf32, #tpu.memory_space<vmem>>, %arg5: memref<1x1x3x1xf32, #tpu.memory_space<vmem>>, %arg6: memref<1x1x4x1xf32, #tpu.memory_space<vmem>>, %arg7: memref<3x16x128xf32, #tpu.memory_space<vmem>>, %arg8: memref<4x16x128xf32, #tpu.memory_space<vmem>>) attributes {dimension_semantics = [#tpu.dimension_semantics<parallel>, #tpu.dimension_semantics<parallel>, #tpu.dimension_semantics<arbitrary>], iteration_bounds = array<i64: 1, 2, 1>, scalar_prefetch = 0 : i64, scratch_operands = 2 : i64, tpu.core_type = #tpu.core_type<tc>, window_params = [{transform_indices = @transform_0, window_bounds = array<i64: 1, 3, 16, 128>}, {transform_indices = @transform_1, window_bounds = array<i64: 1, 4, 16, 128>}, {transform_indices = @transform_2, window_bounds = array<i64: 1, 1, 3, 1>}, {transform_indices = @transform_3, window_bounds = array<i64: 1, 1, 4, 1>}]} {
    %c0_i32 = arith.constant 0 : i32
    %0 = arith.cmpi eq, %arg2, %c0_i32 : i32
    %1 = arith.extui %0 : i1 to i32
    %c0_i32_0 = arith.constant 0 : i32
    %2 = arith.cmpi ne, %1, %c0_i32_0 : i32
    scf.if %2 {
      %cst_23 = arith.constant 0xFF800000 : f32
      %31 = vector.broadcast %cst_23 : f32 to vector<3x16x128xf32>
      %c0_24 = arith.constant 0 : index
      %c0_25 = arith.constant 0 : index
      %c0_26 = arith.constant 0 : index
      %32 = vector.load %arg7[%c0_24, %c0_25, %c0_26] : memref<3x16x128xf32, #tpu.memory_space<vmem>>, vector<3x16x128xf32>
      tpu.vector_store %arg7[%c0_24, %c0_25, %c0_26], %31 {strides = array<i32>} : memref<3x16x128xf32, #tpu.memory_space<vmem>>, vector<3x16x128xf32>,
      %cst_27 = arith.constant 0xFF800000 : f32
      %33 = vector.broadcast %cst_27 : f32 to vector<4x16x128xf32>
      %c0_28 = arith.constant 0 : index
      %c0_29 = arith.constant 0 : index
      %c0_30 = arith.constant 0 : index
      %34 = vector.load %arg8[%c0_28, %c0_29, %c0_30] : memref<4x16x128xf32, #tpu.memory_space<vmem>>, vector<4x16x128xf32>
      tpu.vector_store %arg8[%c0_28, %c0_29, %c0_30], %33 {strides = array<i32>} : memref<4x16x128xf32, #tpu.memory_space<vmem>>, vector<4x16x128xf32>,
    } else {
    }
    %c1_i32 = arith.constant 1 : i32
    %3 = arith.muli %arg0, %c1_i32 : i32
    %4 = arith.addi %3, %arg2 : i32
    %c16_i32 = arith.constant 16 : i32
    %5 = arith.muli %4, %c16_i32 : i32
    %c9_i32 = arith.constant 9 : i32
    %6 = arith.subi %c9_i32, %5 : i32
    %7 = tpu.iota {dimensions = array<i32: 1>} : vector<1x16x128xi32>
    %8 = vector.broadcast %6 : i32 to vector<1x16x128xi32>
    %9 = arith.cmpi slt, %7, %8 : vector<1x16x128xi32>
    %c0 = arith.constant 0 : index
    %c0_1 = arith.constant 0 : index
    %c0_2 = arith.constant 0 : index
    %c0_3 = arith.constant 0 : index
    %10 = vector.load %arg3[%c0, %c0_1, %c0_2, %c0_3] : memref<1x3x16x128xf32, #tpu.memory_space<vmem>>, vector<1x3x16x128xf32>
    %11 = vector.shape_cast %10 : vector<1x3x16x128xf32> to vector<3x16x128xf32>
    %cst = arith.constant 0xFF800000 : f32
    %12 = vector.shape_cast %9 : vector<1x16x128xi1> to vector<1x16x128xi1>
    %13 = vector.broadcast %12 : vector<1x16x128xi1> to vector<3x16x128xi1>
    %14 = vector.broadcast %cst : f32 to vector<3x16x128xf32>
    %15 = arith.select %13, %11, %14 : vector<3x16x128xi1>, vector<3x16x128xf32>
    %c0_4 = arith.constant 0 : index
    %c0_5 = arith.constant 0 : index
    %c0_6 = arith.constant 0 : index
    %16 = vector.load %arg7[%c0_4, %c0_5, %c0_6] : memref<3x16x128xf32, #tpu.memory_space<vmem>>, vector<3x16x128xf32>
    %17 = arith.maximumf %16, %15 : vector<3x16x128xf32>
    %c0_7 = arith.constant 0 : index
    %c0_8 = arith.constant 0 : index
    %c0_9 = arith.constant 0 : index
    %18 = vector.load %arg7[%c0_7, %c0_8, %c0_9] : memref<3x16x128xf32, #tpu.memory_space<vmem>>, vector<3x16x128xf32>
    tpu.vector_store %arg7[%c0_7, %c0_8, %c0_9], %17 {strides = array<i32>} : memref<3x16x128xf32, #tpu.memory_space<vmem>>, vector<3x16x128xf32>,
    %c0_10 = arith.constant 0 : index
    %c0_11 = arith.constant 0 : index
    %c0_12 = arith.constant 0 : index
    %c0_13 = arith.constant 0 : index
    %19 = vector.load %arg4[%c0_10, %c0_11, %c0_12, %c0_13] : memref<1x4x16x128xf32, #tpu.memory_space<vmem>>, vector<1x4x16x128xf32>
    %20 = vector.shape_cast %19 : vector<1x4x16x128xf32> to vector<4x16x128xf32>
    %cst_14 = arith.constant 0xFF800000 : f32
    %21 = vector.shape_cast %9 : vector<1x16x128xi1> to vector<1x16x128xi1>
    %22 = vector.broadcast %21 : vector<1x16x128xi1> to vector<4x16x128xi1>
    %23 = vector.broadcast %cst_14 : f32 to vector<4x16x128xf32>
    %24 = arith.select %22, %20, %23 : vector<4x16x128xi1>, vector<4x16x128xf32>
    %c0_15 = arith.constant 0 : index
    %c0_16 = arith.constant 0 : index
    %c0_17 = arith.constant 0 : index
    %25 = vector.load %arg8[%c0_15, %c0_16, %c0_17] : memref<4x16x128xf32, #tpu.memory_space<vmem>>, vector<4x16x128xf32>
    %26 = arith.maximumf %25, %24 : vector<4x16x128xf32>
    %c0_18 = arith.constant 0 : index
    %c0_19 = arith.constant 0 : index
    %c0_20 = arith.constant 0 : index
    %27 = vector.load %arg8[%c0_18, %c0_19, %c0_20] : memref<4x16x128xf32, #tpu.memory_space<vmem>>, vector<4x16x128xf32>
    tpu.vector_store %arg8[%c0_18, %c0_19, %c0_20], %26 {strides = array<i32>} : memref<4x16x128xf32, #tpu.memory_space<vmem>>, vector<4x16x128xf32>,
    %c0_i32_21 = arith.constant 0 : i32
    %28 = arith.cmpi eq, %arg2, %c0_i32_21 : i32
    %29 = arith.extui %28 : i1 to i32
    %c0_i32_22 = arith.constant 0 : i32
    %30 = arith.cmpi ne, %29, %c0_i32_22 : i32
    scf.if %30 {
      %c0_23 = arith.constant 0 : index
      %c0_24 = arith.constant 0 : index
      %c0_25 = arith.constant 0 : index
      %31 = vector.load %arg7[%c0_23, %c0_24, %c0_25] : memref<3x16x128xf32, #tpu.memory_space<vmem>>, vector<3x16x128xf32>
      %cst_26 = arith.constant dense<0xFF800000> : vector<3x16xf32>
      %32 = vector.multi_reduction <maximumf>, %31, %cst_26 [2] : vector<3x16x128xf32> to vector<3x16xf32>
      %cst_27 = arith.constant dense<0xFF800000> : vector<3xf32>
      %33 = vector.multi_reduction <maximumf>, %32, %cst_27 [1] : vector<3x16xf32> to vector<3xf32>
      %34 = vector.shape_cast %33 : vector<3xf32> to vector<3x1xf32>
      %c0_28 = arith.constant 0 : index
      %c0_29 = arith.constant 0 : index
      %c0_30 = arith.constant 0 : index
      %c0_31 = arith.constant 0 : index
      %35 = vector.load %arg5[%c0_28, %c0_29, %c0_30, %c0_31] : memref<1x1x3x1xf32, #tpu.memory_space<vmem>>, vector<1x1x3x1xf32>
      %36 = vector.shape_cast %35 : vector<1x1x3x1xf32> to vector<3x1xf32>
      %37 = vector.shape_cast %34 : vector<3x1xf32> to vector<1x1x3x1xf32>
      tpu.vector_store %arg5[%c0_28, %c0_29, %c0_30, %c0_31], %37 {strides = array<i32>} : memref<1x1x3x1xf32, #tpu.memory_space<vmem>>, vector<1x1x3x1xf32>,
      %c0_32 = arith.constant 0 : index
      %c0_33 = arith.constant 0 : index
      %c0_34 = arith.constant 0 : index
      %38 = vector.load %arg8[%c0_32, %c0_33, %c0_34] : memref<4x16x128xf32, #tpu.memory_space<vmem>>, vector<4x16x128xf32>
      %cst_35 = arith.constant dense<0xFF800000> : vector<4x16xf32>
      %39 = vector.multi_reduction <maximumf>, %38, %cst_35 [2] : vector<4x16x128xf32> to vector<4x16xf32>
      %cst_36 = arith.constant dense<0xFF800000> : vector<4xf32>
      %40 = vector.multi_reduction <maximumf>, %39, %cst_36 [1] : vector<4x16xf32> to vector<4xf32>
      %41 = vector.shape_cast %40 : vector<4xf32> to vector<4x1xf32>
      %c0_37 = arith.constant 0 : index
      %c0_38 = arith.constant 0 : index
      %c0_39 = arith.constant 0 : index
      %c0_40 = arith.constant 0 : index
      %42 = vector.load %arg6[%c0_37, %c0_38, %c0_39, %c0_40] : memref<1x1x4x1xf32, #tpu.memory_space<vmem>>, vector<1x1x4x1xf32>
      %43 = vector.shape_cast %42 : vector<1x1x4x1xf32> to vector<4x1xf32>
      %44 = vector.shape_cast %41 : vector<4x1xf32> to vector<1x1x4x1xf32>
      tpu.vector_store %arg6[%c0_37, %c0_38, %c0_39, %c0_40], %44 {strides = array<i32>} : memref<1x1x4x1xf32, #tpu.memory_space<vmem>>, vector<1x1x4x1xf32>,
    } else {
    }
    return
  }
  func.func @transform_0(%arg0: i32, %arg1: i32, %arg2: i32) -> (i32, i32, i32, i32) {
    %c1_i32 = arith.constant 1 : i32
    %0 = arith.muli %arg0, %c1_i32 : i32
    %1 = arith.addi %0, %arg2 : i32
    %c0_i32 = arith.constant 0 : i32
    %2 = arith.minsi %1, %c0_i32 : i32
    %c0_i32_0 = arith.constant 0 : i32
    %c0_i32_1 = arith.constant 0 : i32
    %c0_i32_2 = arith.constant 0 : i32
    return %arg1, %c0_i32_0, %2, %c0_i32_1 : i32, i32, i32, i32
  }
  func.func @transform_1(%arg0: i32, %arg1: i32, %arg2: i32) -> (i32, i32, i32, i32) {
    %c1_i32 = arith.constant 1 : i32
    %0 = arith.muli %arg0, %c1_i32 : i32
    %1 = arith.addi %0, %arg2 : i32
    %c0_i32 = arith.constant 0 : i32
    %2 = arith.minsi %1, %c0_i32 : i32
    %c0_i32_0 = arith.constant 0 : i32
    %c0_i32_1 = arith.constant 0 : i32
    %c0_i32_2 = arith.constant 0 : i32
    return %arg1, %c0_i32_0, %2, %c0_i32_1 : i32, i32, i32, i32
  }
  func.func @transform_2(%arg0: i32, %arg1: i32, %arg2: i32) -> (i32, i32, i32, i32) {
    %c0_i32 = arith.constant 0 : i32
    %c0_i32_0 = arith.constant 0 : i32
    %c0_i32_1 = arith.constant 0 : i32
    return %arg0, %arg1, %c0_i32, %c0_i32_0 : i32, i32, i32, i32
  }
  func.func @transform_3(%arg0: i32, %arg1: i32, %arg2: i32) -> (i32, i32, i32, i32) {
    %c0_i32 = arith.constant 0 : i32
    %c0_i32_0 = arith.constant 0 : i32
    %c0_i32_1 = arith.constant 0 : i32
    return %arg0, %arg1, %c0_i32, %c0_i32_0 : i32, i32, i32, i32
  }
}

</mosaic_0001>

<bundles_post_ra>
// kernel: tpu_custom_call.1
= control target key start
LH: loop header
LB: loop body
LE: loop exit
PB: predicated region body
PF: predicated region fallthrough
CT: control target
= control target key end

     0   :  { %s795_s12 = smov 0   ;;  %s797_s13 = smov 0   ;;  %s883_s0 = inlined_call_operand.vmem [shape: f32[2,3,9,128], index: 0, kind: input, shape index: {}]   ;;  %s884_s1 = inlined_call_operand.vmem [shape: f32[2,4,9,128], index: 1, kind: input, shape index: {}]   ;;  %s885_s2 = inlined_call_operand.vmem [shape: f32[1,2,3,1], index: 2, kind: output, shape index: {0}]   ;;  %s886_s3 = inlined_call_operand.vmem [shape: f32[1,2,4,1], index: 3, kind: output, shape index: {1}]  }
   0x1   :  { %s799_s14 = smov 0  }
   0x2 LB: > { %s29_s15 = sadd.s32 1, %s769_s13  ;;  %p717_p0 = scmp.ge.s32.totalorder %s773_s14, 1  ;;  %s773_s14 = sphi %s799_s14, %s14_s14   ;;  %s769_s13 = sphi %s797_s13, %s888_s13   ;;  %s765_s12 = sphi %s795_s12, %s887_s12  }
   0x3   : > { %p31_p1 = scmp.ge.s32.totalorder %s29_s15, 2  ;;  %p211_p2 = scmp.lt.s32.totalorder %s773_s14, 3 }
   0x5   : > { %s890_s15 = smov (%p31_p1, %s29_s15), 0  ;;  %p212_p3 = pnand %p717_p0, %p211_p2 }
   0x6   : > { %p269_p4 = scmp.lt.s32.totalorder (!%p212_p3), %s765_s12, 1  ;;  %v334_v0 = vlaneseq (!%p212_p3)  ;;  %vm452_vm1 = vcmask (!%p212_p3), 130112   ;;  %vm472_vm2 = vcmask (!%p212_p3), 1041409   ;;  %vm474_vm3 = vcmask (!%p212_p3), 1042434  }
   0x7   : > { %215 = sbr.rel (%p212_p3) target bundleno = 332 (0x14c), region = 28  ;;  %vm477_vm4 = vcmask (!%p212_p3), 124928   ;;  %vm553_vm5 = vcmask (!%p212_p3), 1043459   ;;  %vm556_vm6 = vcmask (!%p212_p3), 125952   ;;  %vm481_vm7 = vcmask (!%p212_p3), 2048  }
   0x8   : > { %v335_v1 = vshrl.u32 (!%p212_p3), %v334_v0, 7  ;;  %v442_v2 = vand.u32 (!%p212_p3), 127, %v334_v0  ;;  %vm560_vm8 = vcmask (!%p212_p3), 3072  }
   0xa   : > { %v336_v3 = vadd.s32 (!%p212_p3), 8, %v335_v1  ;;  %v816_v4 = vsub.s32 (!%p212_p3), %v442_v2, %v335_v1  ;;  %v447_v5 = vadd.s32 (!%p212_p3), 4294967288, %v442_v2 }
   0xc   : > { %vm339_vm0 = vcmp.lt.s32.totalorder (!%p212_p3), %v336_v3, 9  ;;  %v827_v9 = vsub.s32 (!%p212_p3), %v447_v5, %v335_v1 }
   0xe   : > { %s892_s12 = smov (!%p269_p4, %s765_s12), 1 }
   0xf   : > { %s725_s16 = sshll.u32 %s892_s12, 6  ;;  %s726_s17 = smul.u32 48, %s892_s12 }
  0x10   : > { %s822_s20 = scalar_lea.vmem %s884_s1, %s725_s16  ;;  %s721_s24 = sshll.u32 %s892_s12, 2 }
  0x11   : > { %v376_v6 = vld [vmem:[%s822_s20 + $0x10] sm:$0xff]  ;;  %v374_v7 = vld [vmem:[%s822_s20] sm:$0xff]  ;;  %v377_v8 = vld [vmem:[%s822_s20 + $0x18] sm:$0xff]  ;;  %s276_s23 = scalar_lea.vmem %s883_s0, %s726_s17  ;;  %s304_s27 = scalar_lea.vmem %s885_s2, %s721_s24 }
  0x12   : > { %495 = vmax.xlane.f32.xlu1 %v376_v6  ;;  %491 = vmax.xlane.f32.xlu0 %v374_v7  ;;  %v375_v10 = vld [vmem:[%s822_s20 + $0x8] sm:$0xff]  ;;  %v385_v11 = vsel %vm339_vm0, %v377_v8, -inf  ;;  %v340_v15 = vld [vmem:[%s276_s23] sm:$0xff]  ;;  %v343_v16 = vld [vmem:[%s276_s23 + $0x18] sm:$0xff]  ;;  %s312_s30 = scalar_lea.vmem %s886_s3, %s721_s24 }
  0x13   : > { %v383_v12 = vsel %vm339_vm0, %v375_v10, -inf  ;;  %v341_v13 = vld [vmem:[%s276_s23 + $0x8] sm:$0xff]  ;;  %v353_v17 = vsel %vm339_vm0, %v343_v16, -inf  ;;  %v342_v18 = vld [vmem:[%s276_s23 + $0x10] sm:$0xff]  ;;  %v378_v21 = vld [vmem:[%s822_s20 + $0x20] sm:$0xff] }
  0x14   : > { %v351_v14 = vsel %vm339_vm0, %v341_v13, -inf  ;;  %v379_v19 = vld [vmem:[%s822_s20 + $0x28] sm:$0xff]  ;;  %v344_v24 = vld [vmem:[%s276_s23 + $0x20] sm:$0xff]  ;;  %v381_v25 = vld [vmem:[%s822_s20 + $0x38] sm:$0xff] }
  0x15   : > { %v387_v20 = vsel %vm339_vm0, %v379_v19, -inf  ;;  %v345_v22 = vld [vmem:[%s276_s23 + $0x28] sm:$0xff]  ;;  %v389_v26 = vsel %vm339_vm0, %v381_v25, -inf  ;;  %v380_v27 = vld [vmem:[%s822_s20 + $0x30] sm:$0xff] }
  0x16   : > { %497 = vmax.xlane.f32.xlu1 %v385_v11  ;;  %493 = vmax.xlane.f32.xlu0 %v383_v12  ;;  %v355_v23 = vsel %vm339_vm0, %v345_v22, -inf }
  0x1a   : > { %425 = vmax.xlane.f32.xlu1 %v351_v14  ;;  %423 = vmax.xlane.f32.xlu0 %v340_v15 }
  0x1e   : > { %429 = vmax.xlane.f32.xlu1 %v353_v17  ;;  %427 = vmax.xlane.f32.xlu0 %v342_v18 }
  0x22   : > { %501 = vmax.xlane.f32.xlu1 %v387_v20  ;;  %499 = vmax.xlane.f32.xlu0 %v378_v21 }
  0x26   : > { %433 = vmax.xlane.f32.xlu1 %v355_v23  ;;  %431 = vmax.xlane.f32.xlu0 %v344_v24 }
  0x2a   : > { %505 = vmax.xlane.f32.xlu1 %v389_v26  ;;  %503 = vmax.xlane.f32.xlu0 %v380_v27 }
  0x9f   : > { %v496_v28 = vpop.xlane.xlu1 %495  ;;  %v492_v29 = vpop.xlane.xlu0 %491 }
  0xa0   : > { %v527_v32 = vrot.slane %v496_v28, %v816_v4  ;;  %v518_v33 = vrot.slane %v492_v29, %v816_v4 }
  0xa3   : > { %v498_v30 = vpop.xlane.xlu1 %497  ;;  %v494_v31 = vpop.xlane.xlu0 %493 }
  0xa4   : > { %v531_v34 = vrot.slane %v498_v30, %v827_v9  ;;  %v522_v35 = vrot.slane %v494_v31, %v827_v9 }
  0xa6   : > { %v532_v36 = vsel %vm452_vm1, %v531_v34, %v527_v32  ;;  %v523_v37 = vsel %vm452_vm1, %v522_v35, %v518_v33 }
  0xa7   : > { %v426_v38 = vpop.xlane.xlu1 %425  ;;  %v424_v39 = vpop.xlane.xlu0 %423  ;;  %v551_v40 = vsel %vm472_vm2, %v532_v36, %v523_v37 }
  0xa8   : > { %v451_v41 = vrot.slane %v426_v38, %v827_v9  ;;  %v446_v42 = vrot.slane %v424_v39, %v816_v4 }
  0xaa   : > { %v453_v43 = vsel %vm452_vm1, %v451_v41, %v446_v42 }
  0xab   : > { %v430_v44 = vpop.xlane.xlu1 %429  ;;  %v428_v45 = vpop.xlane.xlu0 %427 }
  0xac   : > { %v461_v46 = vrot.slane %v430_v44, %v827_v9  ;;  %v457_v47 = vrot.slane %v428_v45, %v816_v4 }
  0xae   : > { %v462_v48 = vsel %vm452_vm1, %v461_v46, %v457_v47 }
  0xaf   : > { %v502_v49 = vpop.xlane.xlu1 %501  ;;  %v500_v50 = vpop.xlane.xlu0 %499  ;;  %v473_v51 = vsel %vm472_vm2, %v462_v48, %v453_v43 }
  0xb0   : > { %v540_v52 = vrot.slane %v502_v49, %v827_v9  ;;  %v536_v53 = vrot.slane %v500_v50, %v816_v4 }
  0xb2   : > { %v541_v54 = vsel %vm452_vm1, %v540_v52, %v536_v53 }
  0xb3   : > { %v434_v55 = vpop.xlane.xlu1 %433  ;;  %v432_v56 = vpop.xlane.xlu0 %431  ;;  %v552_v57 = vsel %vm474_vm3, %v541_v54, %v551_v40 }
  0xb4   : > { %v470_v58 = vrot.slane %v434_v55, %v827_v9  ;;  %v466_v59 = vrot.slane %v432_v56, %v816_v4 }
  0xb6   : > { %v471_v60 = vsel %vm452_vm1, %v470_v58, %v466_v59 }
  0xb7   : > { %v506_v61 = vpop.xlane.xlu1 %505  ;;  %v504_v62 = vpop.xlane.xlu0 %503  ;;  %v475_v63 = vsel %vm474_vm3, %v471_v60, %v473_v51 }
  0xb8   : > { %v549_v0 = vrot.slane %v506_v61, %v827_v9  ;;  %v545_v1 = vrot.slane %v504_v62, %v816_v4  ;;  %v478_v2 = vsel %vm477_vm4, %v475_v63, -inf }
  0xb9   : > { %479 = vmax.xlane.f32.xlu0 %v478_v2 }
  0xba   : > { %v550_v3 = vsel %vm452_vm1, %v549_v0, %v545_v1 }
  0xbb   : > { %v554_v5 = vsel %vm553_vm5, %v550_v3, %v552_v57 }
  0xbc   : > { %v557_v6 = vsel %vm556_vm6, %v554_v5, -inf }
  0xbd   : > { %558 = vmax.xlane.f32.xlu1 %v557_v6 }
 0x146   : > { %v480_v7 = vpop.xlane.xlu0 %479 }
 0x147   : > { %482 = vst.msk [vmem:[%s304_s27] sm:$0x7] %vm481_vm7, %v480_v7 }
 0x14a   : > { %v559_v4 = vpop.xlane.xlu1 %558 }
 0x14b   : > { %561 = vst.msk [vmem:[%s312_s30] sm:$0xf] %vm560_vm8, %v559_v4 }
 0x14c PF: > { %s14_s14 = sadd.s32 1, %s773_s14   ;;  %s887_s12 = smov %s769_s13 }
 0x14d   : > { %p11_p5 = scmp.ge.s32.totalorder %s14_s14, 4   ;;  %s888_s13 = smov %s890_s15 }
 0x14f   :  { %13 = sbr.rel (!%p11_p5) target bundleno = 2 (0x2), region = 81 }

</bundles_post_ra>
